<compile_context>
chip_gen: v7x
topology: tpu7x:2x2x1
jax: 0.10.0
libtpu: 0.0.40
codegen_flags: <defaults>
</compile_context>

<pallas_src>
import math
import functools

import jax
import jax.numpy as jnp
from jax import lax
from jax.experimental import pallas as pl
from jax.experimental.pallas import tpu as pltpu


def _round_up(x, m):
    return ((x + m - 1) // m) * m


# ----------------------------------------------------------------------------
# Pallas kernel: one (nc-tile, pixel-tile, K-chunk) grid step.
# ----------------------------------------------------------------------------
def _dmg_kernel(peak_ref, geo_ref, xyo_ref, out_ref, acc_ref, *, mask_width):
    # peak_ref : (TNC, KC)  bf16   0/1 peaks (rows n*C+c, cols a*R+r or gathered)
    # geo_ref  : (KC, 8)    f32    columns [cos, sin, rho, 0...]
    # xyo_ref  : (8, TP)    f32    rows    [x,   y,  -1,  0...]
    # out_ref  : (TNC, TP)  f32
    # acc_ref  : (TNC, TP)  f32    hit-count accumulator across K chunks
    k = pl.program_id(2)

    @pl.when(k == 0)
    def _():
        acc_ref[...] = jnp.zeros_like(acc_ref)

    # signed distance rho_cal - rho = cos*x + sin*y - rho, computed on the MXU
    d = jnp.dot(geo_ref[...], xyo_ref[...], preferred_element_type=jnp.float32)
    # 0/1 line indicator; bf16 is exact for 0/1 and halves the MXU operand width.
    # (Comparison itself stays in f32 — required numerically, and v5e has no
    #  bf16 VPU path anyway.)
    line = (jnp.abs(d) < mask_width).astype(jnp.bfloat16)        # (KC, TP)
    # max-over-peaks == any-hit, so a sum contraction followed by >0 is exact.
    acc_ref[...] += jnp.dot(peak_ref[...], line,
                            preferred_element_type=jnp.float32)  # (TNC, TP)

    @pl.when(k == pl.num_programs(2) - 1)
    def _():
        out_ref[...] = (acc_ref[...] > 0.0).astype(out_ref.dtype)


# ----------------------------------------------------------------------------
# Glue: peak detection, geometry tables, pallas_call wiring.
# ----------------------------------------------------------------------------
def _peak_detection(hough_map):
    """PeakDetection.forward: 3x3 max-pool (stride 1, pad 1) equality + 0.5*amax."""
    pooled = lax.reduce_window(
        hough_map, -jnp.inf, lax.max,
        window_dimensions=(1, 1, 3, 3),
        window_strides=(1, 1, 1, 1),
        padding=((0, 0), (0, 0), (1, 1), (1, 1)))
    amax = jnp.max(hough_map, axis=(-2, -1), keepdims=True)
    peak = (hough_map == pooled) & (hough_map > 0.5 * amax)
    return peak.astype(jnp.float32)


def _geometry(image_size, num_angle, num_rho):
    """Stacked geometry slabs: geo (A*R, 8) = [cos|sin|rho|0..],
       xyo (8, H*W) = [x; y; -1; 0..]  so that  geo @ xyo = cos*x + sin*y - rho."""
    H, W = image_size
    theta = jnp.arange(num_angle, dtype=jnp.float32) * (math.pi / num_angle)
    max_rho = math.sqrt((W / 2.0) ** 2 + (H / 2.0) ** 2)
    delta_rho = 2.0 * max_rho / (num_rho - 1)
    rho = (jnp.arange(num_rho, dtype=jnp.float32) - num_rho / 2.0) * delta_rho

    AR = num_angle * num_rho
    cos_col = jnp.repeat(jnp.cos(theta), num_rho)          # (a major, r minor)
    sin_col = jnp.repeat(jnp.sin(theta), num_rho)
    rho_col = jnp.tile(rho, num_angle)
    zcol = jnp.zeros((AR,), jnp.float32)
    geo = jnp.stack([cos_col, sin_col, rho_col, zcol, zcol, zcol, zcol, zcol],
                    axis=1)                                 # (AR, 8)

    xs = jnp.arange(W, dtype=jnp.float32) - (W - 1) / 2.0
    ys = jnp.arange(H, dtype=jnp.float32) - (H - 1) / 2.0
    Yg, Xg = jnp.meshgrid(ys, xs, indexing="ij")            # matches torch 'ij'
    HW = H * W
    zrow = jnp.zeros((HW,), jnp.float32)
    xyo = jnp.stack([Xg.reshape(HW), Yg.reshape(HW),
                     -jnp.ones((HW,), jnp.float32),
                     zrow, zrow, zrow, zrow, zrow], axis=0)  # (8, HW)
    return geo, xyo


def _launch(peak2d, geo, xyo, mask_width, pixel_tile, ar_chunk, nc_tile):
    NC, K = peak2d.shape
    HW = xyo.shape[1]

    tp = min(_round_up(pixel_tile, 128), _round_up(HW, 128))   # lane-dense output
    kc = min(_round_up(ar_chunk, 128), _round_up(K, 128))      # bounds (kc, tp) temps
    tnc = min(_round_up(nc_tile, 8), _round_up(NC, 8))

    HW_pad = _round_up(HW, tp)
    K_pad = _round_up(K, kc)
    NC_pad = _round_up(NC, tnc)

    # Zero padding is safe: padded peak rows/cols contribute nothing; padded
    # pixel columns may produce spurious hits but are sliced off below.
    if K_pad != K or NC_pad != NC:
        peak2d = jnp.pad(peak2d, ((0, NC_pad - NC), (0, K_pad - K)))
    if K_pad != K:
        geo = jnp.pad(geo, ((0, K_pad - K), (0, 0)))
    if HW_pad != HW:
        xyo = jnp.pad(xyo, ((0, 0), (0, HW_pad - HW)))

    grid = (NC_pad // tnc, HW_pad // tp, K_pad // kc)
    kernel = functools.partial(_dmg_kernel, mask_width=float(mask_width))

    out = pl.pallas_call(
        kernel,
        out_shape=jax.ShapeDtypeStruct((NC_pad, HW_pad), jnp.float32),
        grid_spec=pltpu.PrefetchScalarGridSpec(
            num_scalar_prefetch=0,
            grid=grid,
            in_specs=[
                pl.BlockSpec((tnc, kc), lambda i, p, k: (i, k)),   # peak (bf16)
                pl.BlockSpec((kc, 8), lambda i, p, k: (k, 0)),     # [cos|sin|rho|0..]
                pl.BlockSpec((8, tp), lambda i, p, k: (0, p)),     # [x;y;-1;0..]
            ],
            out_specs=pl.BlockSpec((tnc, tp), lambda i, p, k: (i, p)),
            scratch_shapes=[pltpu.VMEM((tnc, tp), jnp.float32)],   # hit accumulator
        ),
        compiler_params=pltpu.CompilerParams(
            dimension_semantics=("parallel", "parallel", "arbitrary"),
            vmem_limit_bytes=32 * 1024 * 1024,
        ),
    )(peak2d, geo, xyo)
    return out[:NC, :HW]


def directional_mask_generator(hough_map, image_size, num_angle, num_rho,
                               mask_width=3.0, *, pixel_tile=512, ar_chunk=512,
                               nc_tile=128, max_peaks=None):
    N, C, A, R = hough_map.shape
    assert (A, R) == (num_angle, num_rho)
    H, W = image_size
    NC, AR = N * C, A * R

    hough_map = hough_map.astype(jnp.float32)
    peak2d = _peak_detection(hough_map).reshape(NC, AR)     # 0/1 float32
    geo, xyo = _geometry(image_size, A, R)

    if max_peaks is not None:
        # Peak-sparsity path: contract only over the union (across all N*C maps)
        # of (angle, rho) cells that host at least one peak.  `max_peaks` must be
        # an upper bound on that count; surplus slots are masked out.
        col_hit = jnp.any(peak2d > 0.0, axis=0)
        idx = jnp.nonzero(col_hit, size=max_peaks, fill_value=0)[0]
        valid = (jnp.arange(max_peaks) < jnp.sum(col_hit)).astype(peak2d.dtype)
        peak2d = peak2d[:, idx] * valid[None, :]
        geo = geo[idx, :]

    # peak cast to bf16 (exact for 0/1): halves VMEM/DMA and feeds the MXU natively.
    out = _launch(peak2d.astype(jnp.bfloat16), geo, xyo, mask_width,
                  pixel_tile, ar_chunk, nc_tile)
    return out.reshape(N, C, H, W)


# ----------------------------------------------------------------------------
# Pure-JAX reference (mirrors the PyTorch forward, dense formulation).
# ----------------------------------------------------------------------------
def _reference(hough_map, image_size, num_angle, num_rho, mask_width=3.0):
    N, C, A, R = hough_map.shape
    H, W = image_size
    peak2d = _peak_detection(hough_map.astype(jnp.float32)).reshape(N * C, A * R)
    geo, xyo = _geometry(image_size, A, R)
    d = geo @ xyo                                           # cos*x + sin*y - rho
    line = (jnp.abs(d) < mask_width).astype(jnp.float32)
    hits = peak2d @ line
    return (hits > 0.0).astype(jnp.float32).reshape(N, C, H, W)


# TODO(synk): the torch.cuda.mem_get_info-based peak batching loop is a memory
# heuristic with no semantic effect; the dense / capacity-bounded contraction
# above covers all peaks in one pass.

if __name__ == "__main__":
    key = jax.random.PRNGKey(0)
    N, C = 2, 4
    num_angle, num_rho = 16, 16
    H, W = 16, 16
    mask_width = 3.0

    hough = jax.random.uniform(key, (N, C, num_angle, num_rho), dtype=jnp.float32)

    # The kernel computes the signed distance on the MXU (bf16x3-style f32 path),
    # which may differ from the XLA reference by ~1e-5 at exact-threshold points.
    # Bracket the nominal threshold so the check is robust to last-ulp flips while
    # still being a tight correctness test (0/1 outputs, monotone in threshold).
    eps = 1e-3
    ref_lo = _reference(hough, (H, W), num_angle, num_rho, mask_width - eps)
    ref_hi = _reference(hough, (H, W), num_angle, num_rho, mask_width + eps)

    # Dense path.
    out = directional_mask_generator(hough, (H, W), num_angle, num_rho, mask_width)
    out = jax.block_until_ready(out)
    assert out.shape == (N, C, H, W), out.shape
    assert out.dtype == jnp.float32
    assert bool(jnp.all((out >= ref_lo) & (out <= ref_hi))), "dense path mismatch"

    # Sparse (gathered-peak) path, with a provably sufficient peak capacity.
    peak_cols = int(jnp.sum(jnp.any(
        _peak_detection(hough).reshape(N * C, num_angle * num_rho) > 0, axis=0)))
    out_s = directional_mask_generator(hough, (H, W), num_angle, num_rho,
                                       mask_width, max_peaks=max(peak_cols, 1))
    out_s = jax.block_until_ready(out_s)
    assert bool(jnp.all((out_s >= ref_lo) & (out_s <= ref_hi))), "sparse path mismatch"

    print("KERNEL_OK")
</pallas_src>

<mosaic_0001>
module attributes {stable_mosaic.version = 11 : i64} {
  func.func @_dmg_kernel(%arg0: i32, %arg1: i32, %arg2: i32, %arg3: memref<8x256xbf16, #tpu.memory_space<vmem>>, %arg4: memref<256x8xf32, #tpu.memory_space<vmem>>, %arg5: memref<8x256xf32, #tpu.memory_space<vmem>>, %arg6: memref<8x256xf32, #tpu.memory_space<vmem>>, %arg7: memref<8x256xf32, #tpu.memory_space<vmem>>) attributes {dimension_semantics = [#tpu.dimension_semantics<parallel>, #tpu.dimension_semantics<parallel>, #tpu.dimension_semantics<arbitrary>], iteration_bounds = array<i64: 1, 1, 1>, scalar_prefetch = 0 : i64, scratch_operands = 1 : i64, tpu.core_type = #tpu.core_type<tc>, window_params = [{transform_indices = @transform_0, window_bounds = array<i64: 8, 256>}, {transform_indices = @transform_1, window_bounds = array<i64: 256, 8>}, {transform_indices = @transform_2, window_bounds = array<i64: 8, 256>}, {transform_indices = @transform_3, window_bounds = array<i64: 8, 256>}]} {
    %c0_i32 = arith.constant 0 : i32
    %0 = arith.cmpi eq, %arg2, %c0_i32 : i32
    %1 = arith.extui %0 : i1 to i32
    %c0_i32_0 = arith.constant 0 : i32
    %2 = arith.cmpi ne, %1, %c0_i32_0 : i32
    scf.if %2 {
      %cst_14 = arith.constant 0.000000e+00 : f32
      %20 = vector.broadcast %cst_14 : f32 to vector<8x256xf32>
      %c0_15 = arith.constant 0 : index
      %c0_16 = arith.constant 0 : index
      %21 = vector.load %arg7[%c0_15, %c0_16] : memref<8x256xf32, #tpu.memory_space<vmem>>, vector<8x256xf32>
      tpu.vector_store %arg7[%c0_15, %c0_16], %20 {strides = array<i32>} : memref<8x256xf32, #tpu.memory_space<vmem>>, vector<8x256xf32>,
    } else {
    }
    %c0 = arith.constant 0 : index
    %c0_1 = arith.constant 0 : index
    %3 = vector.load %arg4[%c0, %c0_1] : memref<256x8xf32, #tpu.memory_space<vmem>>, vector<256x8xf32>
    %c0_2 = arith.constant 0 : index
    %c0_3 = arith.constant 0 : index
    %4 = vector.load %arg5[%c0_2, %c0_3] : memref<8x256xf32, #tpu.memory_space<vmem>>, vector<8x256xf32>
    %cst = arith.constant dense<0.000000e+00> : vector<256x256xf32>
    %5 = tpu.matmul %3, %4, %cst {dimension_numbers = #tpu.dot_dimension_numbers<[1], [0], [0], [1], [0, 0, 1, 1], [], []>} : vector<256x8xf32>, vector<8x256xf32>, vector<256x256xf32> -> vector<256x256xf32>
    %6 = math.absf %5 : vector<256x256xf32>
    %cst_4 = arith.constant 3.000000e+00 : f32
    %7 = vector.broadcast %cst_4 : f32 to vector<256x256xf32>
    %8 = arith.cmpf olt, %6, %7 : vector<256x256xf32>
    %9 = arith.extui %8 : vector<256x256xi1> to vector<256x256xi32>
    %10 = arith.sitofp %9 : vector<256x256xi32> to vector<256x256xf32>
    %11 = arith.truncf %10 : vector<256x256xf32> to vector<256x256xbf16>
    %c0_5 = arith.constant 0 : index
    %c0_6 = arith.constant 0 : index
    %12 = vector.load %arg7[%c0_5, %c0_6] : memref<8x256xf32, #tpu.memory_space<vmem>>, vector<8x256xf32>
    %c0_7 = arith.constant 0 : index
    %c0_8 = arith.constant 0 : index
    %13 = vector.load %arg3[%c0_7, %c0_8] : memref<8x256xbf16, #tpu.memory_space<vmem>>, vector<8x256xbf16>
    %cst_9 = arith.constant dense<0.000000e+00> : vector<8x256xf32>
    %14 = tpu.matmul %13, %11, %cst_9 {dimension_numbers = #tpu.dot_dimension_numbers<[1], [0], [0], [1], [0, 0, 1, 1], [], []>} : vector<8x256xbf16>, vector<256x256xbf16>, vector<8x256xf32> -> vector<8x256xf32>
    %15 = arith.addf %12, %14 : vector<8x256xf32>
    %c0_10 = arith.constant 0 : index
    %c0_11 = arith.constant 0 : index
    %16 = vector.load %arg7[%c0_10, %c0_11] : memref<8x256xf32, #tpu.memory_space<vmem>>, vector<8x256xf32>
    tpu.vector_store %arg7[%c0_10, %c0_11], %15 {strides = array<i32>} : memref<8x256xf32, #tpu.memory_space<vmem>>, vector<8x256xf32>,
    %c0_i32_12 = arith.constant 0 : i32
    %17 = arith.cmpi eq, %arg2, %c0_i32_12 : i32
    %18 = arith.extui %17 : i1 to i32
    %c0_i32_13 = arith.constant 0 : i32
    %19 = arith.cmpi ne, %18, %c0_i32_13 : i32
    scf.if %19 {
      %c0_14 = arith.constant 0 : index
      %c0_15 = arith.constant 0 : index
      %20 = vector.load %arg7[%c0_14, %c0_15] : memref<8x256xf32, #tpu.memory_space<vmem>>, vector<8x256xf32>
      %cst_16 = arith.constant 0.000000e+00 : f32
      %21 = vector.broadcast %cst_16 : f32 to vector<8x256xf32>
      %22 = arith.cmpf ogt, %20, %21 : vector<8x256xf32>
      %23 = arith.extui %22 : vector<8x256xi1> to vector<8x256xi32>
      %24 = arith.sitofp %23 : vector<8x256xi32> to vector<8x256xf32>
      %c0_17 = arith.constant 0 : index
      %c0_18 = arith.constant 0 : index
      %25 = vector.load %arg6[%c0_17, %c0_18] : memref<8x256xf32, #tpu.memory_space<vmem>>, vector<8x256xf32>
      tpu.vector_store %arg6[%c0_17, %c0_18], %24 {strides = array<i32>} : memref<8x256xf32, #tpu.memory_space<vmem>>, vector<8x256xf32>,
    } else {
    }
    return
  }
  func.func @transform_0(%arg0: i32, %arg1: i32, %arg2: i32) -> (i32, i32) {
    %c0_i32 = arith.constant 0 : i32
    return %arg0, %arg2 : i32, i32
  }
  func.func @transform_1(%arg0: i32, %arg1: i32, %arg2: i32) -> (i32, i32) {
    %c0_i32 = arith.constant 0 : i32
    %c0_i32_0 = arith.constant 0 : i32
    return %arg2, %c0_i32 : i32, i32
  }
  func.func @transform_2(%arg0: i32, %arg1: i32, %arg2: i32) -> (i32, i32) {
    %c0_i32 = arith.constant 0 : i32
    %c0_i32_0 = arith.constant 0 : i32
    return %c0_i32, %arg1 : i32, i32
  }
  func.func @transform_3(%arg0: i32, %arg1: i32, %arg2: i32) -> (i32, i32) {
    %c0_i32 = arith.constant 0 : i32
    return %arg0, %arg1 : i32, i32
  }
}

</mosaic_0001>

<bundles_post_ra>
// kernel: tpu_custom_call.1
= control target key start
LH: loop header
LB: loop body
LE: loop exit
PB: predicated region body
PF: predicated region fallthrough
CT: control target
= control target key end

     0   :  { %vm55_vm0 = vcmask 64512   ;;  %v972_v3 = vmov 0.0   ;;  %s1216_s0 = inlined_call_operand.vmem [shape: bf16[8,256], index: 0, kind: input, shape index: {}]   ;;  %s1217_s1 = inlined_call_operand.vmem [shape: f32[256,8], index: 1, kind: input, shape index: {}]   ;;  %s1218_s2 = inlined_call_operand.vmem [shape: f32[8,256], index: 2, kind: input, shape index: {}]   ;;  %s1219_s3 = inlined_call_operand.hbm [shape: f32[8,256], index: 3, kind: output, shape index: {}]  }
   0x1   :  { %v54_v0 = vld [vmem:[%s1218_s2 + $0x8] sm:$0xff]  ;;  %v53_v1 = vld [vmem:[%s1218_s2] sm:$0xff]  ;;  %216 = vmatprep.mubr.f32.mxu0 %v972_v3  ;;  %v23_v5 = vld [vmem:[%s1217_s1 + $0x10] sm:$0xff] }
   0x2   :  { %v21_v2 = vld [vmem:[%s1217_s1] sm:$0xff]  ;;  %152 = vmatprep.subr.mxu0 %v54_v0  ;;  %v22_v4 = vld [vmem:[%s1217_s1 + $0x8] sm:$0xff] }
   0x3   :  { %153 = vmatpush1.msra.mxu0 %v53_v1 }
   0x4   :  { %779 = vmatmul.mubr.msk.f32.vlgmr.msra.gmra.mrb[0].mxu0 %vm55_vm0, %v21_v2 }
   0x5   :  { %222 = vmatprep.mubr.f32.mxu0 %v972_v3 }
   0x8   :  { %780 = vmatmul.mubr.msk.f32.gmra.mrb[2].mxu0 %vm55_vm0, %v22_v4 }
   0x9   :  { %228 = vmatprep.mubr.f32.mxu0 %v972_v3 }
   0xc   :  { %781 = vmatmul.mubr.msk.f32.gmra.mrb[4].mxu0 %vm55_vm0, %v23_v5 }
   0xd   :  { %8 = vsyncpa [#allocation4], 0  ;;  %234 = vmatprep.mubr.f32.mxu0 %v972_v3  ;;  %v24_v6 = vld [vmem:[%s1217_s1 + $0x18] sm:$0xff]  ;;  %v25_v7 = vld [vmem:[%s1217_s1 + $0x20] sm:$0xff]  ;;  %v973_v47 = vmov 1.0|1.0  }
   0xe   :  { %v26_v8 = vld [vmem:[%s1217_s1 + $0x28] sm:$0xff]  ;;  %v27_v9 = vld [vmem:[%s1217_s1 + $0x30] sm:$0xff]  ;;  %v28_v10 = vld [vmem:[%s1217_s1 + $0x38] sm:$0xff] }
   0xf   :  { %v29_v11 = vld [vmem:[%s1217_s1 + $0x40] sm:$0xff]  ;;  %v30_v12 = vld [vmem:[%s1217_s1 + $0x48] sm:$0xff]  ;;  %v31_v13 = vld [vmem:[%s1217_s1 + $0x50] sm:$0xff] }
  0x10   :  { %782 = vmatmul.mubr.msk.f32.gmra.mrb[6].mxu0 %vm55_vm0, %v24_v6  ;;  %v32_v14 = vld [vmem:[%s1217_s1 + $0x58] sm:$0xff]  ;;  %v33_v15 = vld [vmem:[%s1217_s1 + $0x60] sm:$0xff]  ;;  %v34_v16 = vld [vmem:[%s1217_s1 + $0x68] sm:$0xff] }
  0x11   :  { %240 = vmatprep.mubr.f32.mxu0 %v972_v3  ;;  %v35_v17 = vld [vmem:[%s1217_s1 + $0x70] sm:$0xff]  ;;  %v36_v18 = vld [vmem:[%s1217_s1 + $0x78] sm:$0xff]  ;;  %v37_v19 = vld [vmem:[%s1217_s1 + $0x80] sm:$0xff] }
  0x12   :  { %v38_v20 = vld [vmem:[%s1217_s1 + $0x88] sm:$0xff]  ;;  %v39_v21 = vld [vmem:[%s1217_s1 + $0x90] sm:$0xff]  ;;  %v40_v22 = vld [vmem:[%s1217_s1 + $0x98] sm:$0xff] }
  0x13   :  { %v41_v23 = vld [vmem:[%s1217_s1 + $0xa0] sm:$0xff]  ;;  %v42_v24 = vld [vmem:[%s1217_s1 + $0xa8] sm:$0xff]  ;;  %v43_v25 = vld [vmem:[%s1217_s1 + $0xb0] sm:$0xff] }
  0x14   :  { %783 = vmatmul.mubr.msk.f32.gmra.mrb[8].mxu0 %vm55_vm0, %v25_v7  ;;  %v44_v26 = vld [vmem:[%s1217_s1 + $0xb8] sm:$0xff]  ;;  %v45_v27 = vld [vmem:[%s1217_s1 + $0xc0] sm:$0xff]  ;;  %v46_v28 = vld [vmem:[%s1217_s1 + $0xc8] sm:$0xff] }
  0x15   :  { %246 = vmatprep.mubr.f32.mxu0 %v972_v3  ;;  %v47_v29 = vld [vmem:[%s1217_s1 + $0xd0] sm:$0xff]  ;;  %v48_v30 = vld [vmem:[%s1217_s1 + $0xd8] sm:$0xff]  ;;  %v49_v31 = vld [vmem:[%s1217_s1 + $0xe0] sm:$0xff] }
  0x16   :  { %v50_v32 = vld [vmem:[%s1217_s1 + $0xe8] sm:$0xff]  ;;  %v51_v33 = vld [vmem:[%s1217_s1 + $0xf0] sm:$0xff]  ;;  %v52_v34 = vld [vmem:[%s1217_s1 + $0xf8] sm:$0xff] }
  0x17   :  { %v1164_v37 = vld [vmem:[%s1216_s0] sm:$0xff]  ;;  %s974_s0 = smov [#allocation3]  }
  0x18   :  { %784 = vmatmul.mubr.msk.f32.gmra.mrb[10].mxu0 %vm55_vm0, %v26_v8  ;;  %v876_v39 = vcombine.high %v1164_v37, %v1164_v37  ;;  %s771_s1 = sshll.u32 %s974_s0, 4  ;;  %s772_s1 = int_to_ptr.vmem [resolvable:$true] %s771_s1 }
  0x19   :  { %252 = vmatprep.mubr.f32.mxu0 %v972_v3  ;;  %s948_s25 = scalar_lea.vmem %s772_s1, 256  ;;  %p953_p1 = scmp.lt.s32.totalorder %s772_s1, %s772_s1 }
  0x1a   :  { %739 = vmatprep.mubr.bf16.mxu1 %v876_v39  ;;  %p949_p0 = scmp.ne.s32.totalorder %s772_s1, %s948_s25  ;;  %p954_p2 = scmp.lt.s32.totalorder %s948_s25, %s948_s25 }
  0x1c   :  { %785 = vmatmul.mubr.msk.f32.gmra.mrb[12].mxu0 %vm55_vm0, %v27_v9  ;;  %p955_p3 = por %p954_p2, %p953_p1 }
  0x1d   :  { %258 = vmatprep.mubr.f32.mxu0 %v972_v3 }
  0x1e   :  { %p956_p4 = pnand %p955_p3, %p949_p0 }
  0x20   :  { %786 = vmatmul.mubr.msk.f32.gmra.mrb[14].mxu0 %vm55_vm0, %v28_v10 }
  0x21   :  { %264 = vmatprep.mubr.f32.mxu0 %v972_v3 }
  0x24   :  { %787 = vmatmul.mubr.msk.f32.gmra.mrb[16].mxu0 %vm55_vm0, %v29_v11 }
  0x25   :  { %270 = vmatprep.mubr.f32.mxu0 %v972_v3 }
  0x28   :  { %788 = vmatmul.mubr.msk.f32.gmra.mrb[18].mxu0 %vm55_vm0, %v30_v12 }
  0x29   :  { %276 = vmatprep.mubr.f32.mxu0 %v972_v3 }
  0x2c   :  { %789 = vmatmul.mubr.msk.f32.gmra.mrb[20].mxu0 %vm55_vm0, %v31_v13 }
  0x2d   :  { %282 = vmatprep.mubr.f32.mxu0 %v972_v3 }
  0x30   :  { %790 = vmatmul.mubr.msk.f32.gmra.mrb[22].mxu0 %vm55_vm0, %v32_v14 }
  0x31   :  { %288 = vmatprep.mubr.f32.mxu0 %v972_v3 }
  0x34   :  { %791 = vmatmul.mubr.msk.f32.gmra.mrb[24].mxu0 %vm55_vm0, %v33_v15 }
  0x35   :  { %294 = vmatprep.mubr.f32.mxu0 %v972_v3 }
  0x38   :  { %792 = vmatmul.mubr.msk.f32.gmra.mrb[26].mxu0 %vm55_vm0, %v34_v16 }
  0x39   :  { %300 = vmatprep.mubr.f32.mxu0 %v972_v3 }
  0x3c   :  { %793 = vmatmul.mubr.msk.f32.gmra.mrb[28].mxu0 %vm55_vm0, %v35_v17 }
  0x3d   :  { %306 = vmatprep.mubr.f32.mxu0 %v972_v3 }
  0x40   :  { %794 = vmatmul.mubr.msk.f32.gmra.mrb[30].mxu0 %vm55_vm0, %v36_v18 }
  0x41   :  { %312 = vmatprep.mubr.f32.mxu0 %v972_v3 }
  0x44   :  { %795 = vmatmul.mubr.msk.f32.gmra.mrb[32].mxu0 %vm55_vm0, %v37_v19 }
  0x45   :  { %318 = vmatprep.mubr.f32.mxu0 %v972_v3 }
  0x48   :  { %796 = vmatmul.mubr.msk.f32.gmra.mrb[34].mxu0 %vm55_vm0, %v38_v20 }
  0x49   :  { %324 = vmatprep.mubr.f32.mxu0 %v972_v3 }
  0x4c   :  { %797 = vmatmul.mubr.msk.f32.gmra.mrb[36].mxu0 %vm55_vm0, %v39_v21 }
  0x4d   :  { %330 = vmatprep.mubr.f32.mxu0 %v972_v3 }
  0x50   :  { %798 = vmatmul.mubr.msk.f32.gmra.mrb[38].mxu0 %vm55_vm0, %v40_v22 }
  0x51   :  { %336 = vmatprep.mubr.f32.mxu0 %v972_v3 }
  0x54   :  { %799 = vmatmul.mubr.msk.f32.gmra.mrb[40].mxu0 %vm55_vm0, %v41_v23 }
  0x55   :  { %342 = vmatprep.mubr.f32.mxu0 %v972_v3 }
  0x58   :  { %800 = vmatmul.mubr.msk.f32.gmra.mrb[42].mxu0 %vm55_vm0, %v42_v24 }
  0x59   :  { %348 = vmatprep.mubr.f32.mxu0 %v972_v3 }
  0x5c   :  { %801 = vmatmul.mubr.msk.f32.gmra.mrb[44].mxu0 %vm55_vm0, %v43_v25 }
  0x5d   :  { %354 = vmatprep.mubr.f32.mxu0 %v972_v3 }
  0x60   :  { %802 = vmatmul.mubr.msk.f32.gmra.mrb[46].mxu0 %vm55_vm0, %v44_v26 }
  0x61   :  { %360 = vmatprep.mubr.f32.mxu0 %v972_v3 }
  0x64   :  { %803 = vmatmul.mubr.msk.f32.gmra.mrb[48].mxu0 %vm55_vm0, %v45_v27 }
  0x65   :  { %366 = vmatprep.mubr.f32.mxu0 %v972_v3 }
  0x68   :  { %804 = vmatmul.mubr.msk.f32.gmra.mrb[50].mxu0 %vm55_vm0, %v46_v28 }
  0x69   :  { %372 = vmatprep.mubr.f32.mxu0 %v972_v3 }
  0x6c   :  { %805 = vmatmul.mubr.msk.f32.gmra.mrb[52].mxu0 %vm55_vm0, %v47_v29 }
  0x6d   :  { %378 = vmatprep.mubr.f32.mxu0 %v972_v3 }
  0x70   :  { %806 = vmatmul.mubr.msk.f32.gmra.mrb[54].mxu0 %vm55_vm0, %v48_v30 }
  0x71   :  { %384 = vmatprep.mubr.f32.mxu0 %v972_v3 }
  0x74   :  { %807 = vmatmul.mubr.msk.f32.gmra.mrb[56].mxu0 %vm55_vm0, %v49_v31 }
  0x75   :  { %390 = vmatprep.mubr.f32.mxu0 %v972_v3 }
  0x78   :  { %808 = vmatmul.mubr.msk.f32.gmra.mrb[58].mxu0 %vm55_vm0, %v50_v32 }
  0x79   :  { %396 = vmatprep.mubr.f32.mxu0 %v972_v3 }
  0x7c   :  { %809 = vmatmul.mubr.msk.f32.gmra.mrb[60].mxu0 %vm55_vm0, %v51_v33 }
  0x7d   :  { %402 = vmatprep.mubr.f32.mxu0 %v972_v3 }
  0x80   :  { %810 = vmatmul.mubr.msk.f32.gmra.mrb[62].mxu0 %vm55_vm0, %v52_v34 }
  0xd7   :  { %v218_v35 = vpop.f32.mrb[0].mxu0 }
  0xd8   :  { %v220_v36 = vpop.f32.mrb[1].mxu0  ;;  %v409_v38 = vand.u32 2147483647, %v218_v35 }
  0xd9   :  { %v410_v40 = vand.u32 2147483647, %v220_v36 }
  0xda   :  { %vm473_vm1 = vcmp.lt.f32.partialorder %v409_v38, 3.0 }
  0xdb   :  { %v224_v41 = vpop.f32.mrb[2].mxu0  ;;  %vm474_vm3 = vcmp.lt.f32.partialorder %v410_v40, 3.0 }
  0xdc   :  { %v411_v42 = vand.u32 2147483647, %v224_v41  ;;  %v226_v43 = vpop.f32.mrb[3].mxu0 }
  0xdd   :  { %v412_v44 = vand.u32 2147483647, %v226_v43 }
  0xde   :  { %vm475_vm2 = vcmp.lt.f32.partialorder %v411_v42, 3.0 }
  0xdf   :  { %vm476_vm4 = vcmp.lt.f32.partialorder %v412_v44, 3.0  ;;  %v230_v45 = vpop.f32.mrb[4].mxu0  ;;  %vm879_vm5 = vmpackc.low %vm475_vm2, %vm473_vm1 }
  0xe0   :  { %v232_v46 = vpop.f32.mrb[5].mxu0  ;;  %vm877_vm6 = vmpackc.low %vm476_vm4, %vm474_vm3  ;;  %v413_v48 = vand.u32 2147483647, %v230_v45 }
  0xe1   :  { %878 = vmatprep.subr.msk.bf16.mxu1 %vm877_vm6, %v973_v47  ;;  %v414_v49 = vand.u32 2147483647, %v232_v46 }
  0xe2   :  { %880 = vmatpush1.bf16.msk.msra.mxu1 %vm879_vm5, %v973_v47  ;;  %vm477_vm7 = vcmp.lt.f32.partialorder %v413_v48, 3.0 }
  0xe3   :  { %v236_v50 = vpop.f32.mrb[6].mxu0  ;;  %vm478_vm9 = vcmp.lt.f32.partialorder %v414_v49, 3.0 }
  0xe4   :  { %v415_v51 = vand.u32 2147483647, %v236_v50  ;;  %v238_v52 = vpop.f32.mrb[7].mxu0 }
  0xe5   :  { %v416_v53 = vand.u32 2147483647, %v238_v52 }
  0xe6   :  { %vm479_vm8 = vcmp.lt.f32.partialorder %v415_v51, 3.0 }
  0xe7   :  { %vm883_vm10 = vmpackc.low %vm479_vm8, %vm477_vm7  ;;  %vm480_vm11 = vcmp.lt.f32.partialorder %v416_v53, 3.0  ;;  %v242_v54 = vpop.f32.mrb[8].mxu0 }
  0xe8   :  { %vm881_vm12 = vmpackc.low %vm480_vm11, %vm478_vm9  ;;  %v244_v55 = vpop.f32.mrb[9].mxu0  ;;  %v417_v56 = vand.u32 2147483647, %v242_v54 }
  0xe9   :  { %882 = vmatprep.subr.msk.bf16.mxu1 %vm881_vm12, %v973_v47  ;;  %v418_v57 = vand.u32 2147483647, %v244_v55 }
  0xea   :  { %884 = vmatpush1.bf16.msk.msra.mxu1 %vm883_vm10, %v973_v47  ;;  %vm481_vm13 = vcmp.lt.f32.partialorder %v417_v56, 3.0 }
  0xeb   :  { %v248_v58 = vpop.f32.mrb[10].mxu0  ;;  %vm482_vm15 = vcmp.lt.f32.partialorder %v418_v57, 3.0 }
  0xec   :  { %v419_v59 = vand.u32 2147483647, %v248_v58  ;;  %v250_v60 = vpop.f32.mrb[11].mxu0 }
  0xed   :  { %v420_v61 = vand.u32 2147483647, %v250_v60 }
  0xee   :  { %vm483_vm14 = vcmp.lt.f32.partialorder %v419_v59, 3.0 }
  0xef   :  { %vm887_vm0 = vmpackc.low %vm483_vm14, %vm481_vm13  ;;  %vm484_vm1 = vcmp.lt.f32.partialorder %v420_v61, 3.0  ;;  %v254_v62 = vpop.f32.mrb[12].mxu0 }
  0xf0   :  { %vm885_vm2 = vmpackc.low %vm484_vm1, %vm482_vm15  ;;  %v256_v63 = vpop.f32.mrb[13].mxu0  ;;  %v421_v0 = vand.u32 2147483647, %v254_v62 }
  0xf1   :  { %886 = vmatprep.subr.msk.bf16.mxu1 %vm885_vm2, %v973_v47  ;;  %v422_v1 = vand.u32 2147483647, %v256_v63 }
  0xf2   :  { %888 = vmatpush1.bf16.msk.msra.mxu1 %vm887_vm0, %v973_v47  ;;  %vm485_vm3 = vcmp.lt.f32.partialorder %v421_v0, 3.0 }
  0xf3   :  { %v260_v2 = vpop.f32.mrb[14].mxu0  ;;  %vm486_vm5 = vcmp.lt.f32.partialorder %v422_v1, 3.0 }
  0xf4   :  { %v423_v4 = vand.u32 2147483647, %v260_v2  ;;  %v262_v5 = vpop.f32.mrb[15].mxu0 }
  0xf5   :  { %v424_v6 = vand.u32 2147483647, %v262_v5 }
  0xf6   :  { %vm487_vm4 = vcmp.lt.f32.partialorder %v423_v4, 3.0 }
  0xf7   :  { %vm891_vm6 = vmpackc.low %vm487_vm4, %vm485_vm3  ;;  %vm488_vm7 = vcmp.lt.f32.partialorder %v424_v6, 3.0  ;;  %v266_v7 = vpop.f32.mrb[16].mxu0 }
  0xf8   :  { %vm889_vm8 = vmpackc.low %vm488_vm7, %vm486_vm5  ;;  %v268_v8 = vpop.f32.mrb[17].mxu0  ;;  %v425_v9 = vand.u32 2147483647, %v266_v7 }
  0xf9   :  { %890 = vmatprep.subr.msk.bf16.mxu1 %vm889_vm8, %v973_v47  ;;  %v426_v10 = vand.u32 2147483647, %v268_v8 }
  0xfa   :  { %892 = vmatpush1.bf16.msk.msra.mxu1 %vm891_vm6, %v973_v47  ;;  %vm489_vm9 = vcmp.lt.f32.partialorder %v425_v9, 3.0 }
  0xfb   :  { %v272_v11 = vpop.f32.mrb[18].mxu0  ;;  %vm490_vm11 = vcmp.lt.f32.partialorder %v426_v10, 3.0 }
  0xfc   :  { %v427_v12 = vand.u32 2147483647, %v272_v11  ;;  %v274_v13 = vpop.f32.mrb[19].mxu0 }
  0xfd   :  { %v428_v14 = vand.u32 2147483647, %v274_v13 }
  0xfe   :  { %vm491_vm10 = vcmp.lt.f32.partialorder %v427_v12, 3.0 }
  0xff   :  { %vm895_vm12 = vmpackc.low %vm491_vm10, %vm489_vm9  ;;  %vm492_vm13 = vcmp.lt.f32.partialorder %v428_v14, 3.0  ;;  %v278_v15 = vpop.f32.mrb[20].mxu0 }
 0x100   :  { %vm893_vm14 = vmpackc.low %vm492_vm13, %vm490_vm11  ;;  %v280_v16 = vpop.f32.mrb[21].mxu0  ;;  %v429_v17 = vand.u32 2147483647, %v278_v15 }
 0x101   :  { %894 = vmatprep.subr.msk.bf16.mxu1 %vm893_vm14, %v973_v47  ;;  %v430_v18 = vand.u32 2147483647, %v280_v16 }
 0x102   :  { %896 = vmatpush1.bf16.msk.msra.mxu1 %vm895_vm12, %v973_v47  ;;  %vm493_vm15 = vcmp.lt.f32.partialorder %v429_v17, 3.0 }
 0x103   :  { %v284_v19 = vpop.f32.mrb[22].mxu0  ;;  %vm494_vm1 = vcmp.lt.f32.partialorder %v430_v18, 3.0 }
 0x104   :  { %v431_v20 = vand.u32 2147483647, %v284_v19  ;;  %v286_v21 = vpop.f32.mrb[23].mxu0 }
 0x105   :  { %v432_v22 = vand.u32 2147483647, %v286_v21 }
 0x106   :  { %vm495_vm0 = vcmp.lt.f32.partialorder %v431_v20, 3.0 }
 0x107   :  { %vm899_vm2 = vmpackc.low %vm495_vm0, %vm493_vm15  ;;  %vm496_vm3 = vcmp.lt.f32.partialorder %v432_v22, 3.0  ;;  %v290_v23 = vpop.f32.mrb[24].mxu0 }
 0x108   :  { %vm897_vm4 = vmpackc.low %vm496_vm3, %vm494_vm1  ;;  %v292_v24 = vpop.f32.mrb[25].mxu0  ;;  %v433_v25 = vand.u32 2147483647, %v290_v23 }
 0x109   :  { %898 = vmatprep.subr.msk.bf16.mxu1 %vm897_vm4, %v973_v47  ;;  %v434_v26 = vand.u32 2147483647, %v292_v24 }
 0x10a   :  { %900 = vmatpush1.bf16.msk.msra.mxu1 %vm899_vm2, %v973_v47  ;;  %vm497_vm5 = vcmp.lt.f32.partialorder %v433_v25, 3.0 }
 0x10b   :  { %v296_v27 = vpop.f32.mrb[26].mxu0  ;;  %vm498_vm7 = vcmp.lt.f32.partialorder %v434_v26, 3.0 }
 0x10c   :  { %v435_v28 = vand.u32 2147483647, %v296_v27  ;;  %v298_v29 = vpop.f32.mrb[27].mxu0 }
 0x10d   :  { %v436_v30 = vand.u32 2147483647, %v298_v29 }
 0x10e   :  { %vm499_vm6 = vcmp.lt.f32.partialorder %v435_v28, 3.0 }
 0x10f   :  { %vm903_vm8 = vmpackc.low %vm499_vm6, %vm497_vm5  ;;  %vm500_vm9 = vcmp.lt.f32.partialorder %v436_v30, 3.0  ;;  %v302_v31 = vpop.f32.mrb[28].mxu0 }
 0x110   :  { %vm901_vm10 = vmpackc.low %vm500_vm9, %vm498_vm7  ;;  %v304_v32 = vpop.f32.mrb[29].mxu0  ;;  %v437_v33 = vand.u32 2147483647, %v302_v31 }
 0x111   :  { %902 = vmatprep.subr.msk.bf16.mxu1 %vm901_vm10, %v973_v47  ;;  %v438_v34 = vand.u32 2147483647, %v304_v32 }
 0x112   :  { %904 = vmatpush1.bf16.msk.msra.mxu1 %vm903_vm8, %v973_v47  ;;  %vm501_vm11 = vcmp.lt.f32.partialorder %v437_v33, 3.0 }
 0x113   :  { %v308_v35 = vpop.f32.mrb[30].mxu0  ;;  %vm502_vm13 = vcmp.lt.f32.partialorder %v438_v34, 3.0 }
 0x114   :  { %v439_v36 = vand.u32 2147483647, %v308_v35  ;;  %v310_v38 = vpop.f32.mrb[31].mxu0 }
 0x115   :  { %v440_v39 = vand.u32 2147483647, %v310_v38 }
 0x116   :  { %vm503_vm12 = vcmp.lt.f32.partialorder %v439_v36, 3.0 }
 0x117   :  { %vm907_vm14 = vmpackc.low %vm503_vm12, %vm501_vm11  ;;  %vm504_vm15 = vcmp.lt.f32.partialorder %v440_v39, 3.0  ;;  %v314_v40 = vpop.f32.mrb[32].mxu0 }
 0x118   :  { %vm905_vm0 = vmpackc.low %vm504_vm15, %vm502_vm13  ;;  %v316_v41 = vpop.f32.mrb[33].mxu0  ;;  %v441_v42 = vand.u32 2147483647, %v314_v40 }
 0x119   :  { %906 = vmatprep.subr.msk.bf16.mxu1 %vm905_vm0, %v973_v47  ;;  %v442_v43 = vand.u32 2147483647, %v316_v41 }
 0x11a   :  { %908 = vmatpush1.bf16.msk.msra.mxu1 %vm907_vm14, %v973_v47  ;;  %vm505_vm1 = vcmp.lt.f32.partialorder %v441_v42, 3.0 }
 0x11b   :  { %v320_v44 = vpop.f32.mrb[34].mxu0  ;;  %vm506_vm3 = vcmp.lt.f32.partialorder %v442_v43, 3.0  ;;  %v875_v43 = vcombine.low %v1164_v37, %v1164_v37 }
 0x11c   :  { %v443_v45 = vand.u32 2147483647, %v320_v44  ;;  %v322_v46 = vpop.f32.mrb[35].mxu0 }
 0x11d   :  { %v444_v48 = vand.u32 2147483647, %v322_v46 }
 0x11e   :  { %vm507_vm2 = vcmp.lt.f32.partialorder %v443_v45, 3.0 }
 0x11f   :  { %vm911_vm4 = vmpackc.low %vm507_vm2, %vm505_vm1  ;;  %vm508_vm5 = vcmp.lt.f32.partialorder %v444_v48, 3.0  ;;  %v326_v49 = vpop.f32.mrb[36].mxu0 }
 0x120   :  { %vm909_vm6 = vmpackc.low %vm508_vm5, %vm506_vm3  ;;  %v328_v50 = vpop.f32.mrb[37].mxu0  ;;  %v445_v51 = vand.u32 2147483647, %v326_v49 }
 0x121   :  { %910 = vmatprep.subr.msk.bf16.mxu1 %vm909_vm6, %v973_v47  ;;  %v446_v52 = vand.u32 2147483647, %v328_v50 }
 0x122   :  { %912 = vmatpush1.bf16.msk.msra.mxu1 %vm911_vm4, %v973_v47  ;;  %vm509_vm7 = vcmp.lt.f32.partialorder %v445_v51, 3.0 }
 0x123   :  { %v332_v53 = vpop.f32.mrb[38].mxu0  ;;  %vm510_vm9 = vcmp.lt.f32.partialorder %v446_v52, 3.0 }
 0x124   :  { %v447_v54 = vand.u32 2147483647, %v332_v53  ;;  %v334_v55 = vpop.f32.mrb[39].mxu0 }
 0x125   :  { %v448_v56 = vand.u32 2147483647, %v334_v55 }
 0x126   :  { %vm511_vm8 = vcmp.lt.f32.partialorder %v447_v54, 3.0 }
 0x127   :  { %vm915_vm10 = vmpackc.low %vm511_vm8, %vm509_vm7  ;;  %vm512_vm11 = vcmp.lt.f32.partialorder %v448_v56, 3.0  ;;  %v338_v57 = vpop.f32.mrb[40].mxu0 }
 0x128   :  { %vm913_vm12 = vmpackc.low %vm512_vm11, %vm510_vm9  ;;  %v340_v58 = vpop.f32.mrb[41].mxu0  ;;  %v449_v59 = vand.u32 2147483647, %v338_v57 }
 0x129   :  { %914 = vmatprep.subr.msk.bf16.mxu1 %vm913_vm12, %v973_v47  ;;  %v450_v60 = vand.u32 2147483647, %v340_v58 }
 0x12a   :  { %916 = vmatpush1.bf16.msk.msra.mxu1 %vm915_vm10, %v973_v47  ;;  %vm513_vm13 = vcmp.lt.f32.partialorder %v449_v59, 3.0 }
 0x12b   :  { %v344_v61 = vpop.f32.mrb[42].mxu0  ;;  %vm514_vm15 = vcmp.lt.f32.partialorder %v450_v60, 3.0 }
 0x12c   :  { %v451_v62 = vand.u32 2147483647, %v344_v61  ;;  %v346_v63 = vpop.f32.mrb[43].mxu0 }
 0x12d   :  { %v452_v0 = vand.u32 2147483647, %v346_v63 }
 0x12e   :  { %vm515_vm14 = vcmp.lt.f32.partialorder %v451_v62, 3.0 }
 0x12f   :  { %vm919_vm0 = vmpackc.low %vm515_vm14, %vm513_vm13  ;;  %vm516_vm1 = vcmp.lt.f32.partialorder %v452_v0, 3.0  ;;  %v350_v1 = vpop.f32.mrb[44].mxu0 }
 0x130   :  { %vm917_vm2 = vmpackc.low %vm516_vm1, %vm514_vm15  ;;  %v352_v2 = vpop.f32.mrb[45].mxu0  ;;  %v453_v4 = vand.u32 2147483647, %v350_v1 }
 0x131   :  { %918 = vmatprep.subr.msk.bf16.mxu1 %vm917_vm2, %v973_v47  ;;  %v454_v5 = vand.u32 2147483647, %v352_v2 }
 0x132   :  { %920 = vmatpush1.bf16.msk.msra.mxu1 %vm919_vm0, %v973_v47  ;;  %vm517_vm3 = vcmp.lt.f32.partialorder %v453_v4, 3.0 }
 0x133   :  { %v356_v6 = vpop.f32.mrb[46].mxu0  ;;  %vm518_vm5 = vcmp.lt.f32.partialorder %v454_v5, 3.0 }
 0x134   :  { %v455_v7 = vand.u32 2147483647, %v356_v6  ;;  %v358_v8 = vpop.f32.mrb[47].mxu0 }
 0x135   :  { %v456_v9 = vand.u32 2147483647, %v358_v8 }
 0x136   :  { %vm519_vm4 = vcmp.lt.f32.partialorder %v455_v7, 3.0 }
 0x137   :  { %vm923_vm6 = vmpackc.low %vm519_vm4, %vm517_vm3  ;;  %vm520_vm7 = vcmp.lt.f32.partialorder %v456_v9, 3.0  ;;  %v362_v10 = vpop.f32.mrb[48].mxu0 }
 0x138   :  { %vm921_vm8 = vmpackc.low %vm520_vm7, %vm518_vm5  ;;  %v364_v11 = vpop.f32.mrb[49].mxu0  ;;  %v457_v12 = vand.u32 2147483647, %v362_v10 }
 0x139   :  { %922 = vmatprep.subr.msk.bf16.mxu1 %vm921_vm8, %v973_v47  ;;  %v458_v13 = vand.u32 2147483647, %v364_v11 }
 0x13a   :  { %924 = vmatpush1.bf16.msk.msra.mxu1 %vm923_vm6, %v973_v47  ;;  %vm521_vm9 = vcmp.lt.f32.partialorder %v457_v12, 3.0 }
 0x13b   :  { %v368_v14 = vpop.f32.mrb[50].mxu0  ;;  %vm522_vm11 = vcmp.lt.f32.partialorder %v458_v13, 3.0 }
 0x13c   :  { %v459_v15 = vand.u32 2147483647, %v368_v14  ;;  %v370_v16 = vpop.f32.mrb[51].mxu0 }
 0x13d   :  { %v460_v17 = vand.u32 2147483647, %v370_v16 }
 0x13e   :  { %vm523_vm10 = vcmp.lt.f32.partialorder %v459_v15, 3.0 }
 0x13f   :  { %vm927_vm12 = vmpackc.low %vm523_vm10, %vm521_vm9  ;;  %vm524_vm13 = vcmp.lt.f32.partialorder %v460_v17, 3.0  ;;  %v374_v18 = vpop.f32.mrb[52].mxu0 }
 0x140   :  { %vm925_vm14 = vmpackc.low %vm524_vm13, %vm522_vm11  ;;  %v376_v19 = vpop.f32.mrb[53].mxu0  ;;  %v461_v20 = vand.u32 2147483647, %v374_v18 }
 0x141   :  { %926 = vmatprep.subr.msk.bf16.mxu1 %vm925_vm14, %v973_v47  ;;  %v462_v21 = vand.u32 2147483647, %v376_v19 }
 0x142   :  { %928 = vmatpush1.bf16.msk.msra.mxu1 %vm927_vm12, %v973_v47  ;;  %vm525_vm15 = vcmp.lt.f32.partialorder %v461_v20, 3.0 }
 0x143   :  { %v380_v22 = vpop.f32.mrb[54].mxu0  ;;  %vm526_vm1 = vcmp.lt.f32.partialorder %v462_v21, 3.0 }
 0x144   :  { %v463_v23 = vand.u32 2147483647, %v380_v22  ;;  %v382_v24 = vpop.f32.mrb[55].mxu0 }
 0x145   :  { %v464_v25 = vand.u32 2147483647, %v382_v24 }
 0x146   :  { %vm527_vm0 = vcmp.lt.f32.partialorder %v463_v23, 3.0 }
 0x147   :  { %vm931_vm2 = vmpackc.low %vm527_vm0, %vm525_vm15  ;;  %vm528_vm3 = vcmp.lt.f32.partialorder %v464_v25, 3.0  ;;  %v386_v26 = vpop.f32.mrb[56].mxu0 }
 0x148   :  { %vm929_vm4 = vmpackc.low %vm528_vm3, %vm526_vm1  ;;  %v388_v27 = vpop.f32.mrb[57].mxu0  ;;  %v465_v28 = vand.u32 2147483647, %v386_v26 }
 0x149   :  { %930 = vmatprep.subr.msk.bf16.mxu1 %vm929_vm4, %v973_v47  ;;  %v466_v29 = vand.u32 2147483647, %v388_v27 }
 0x14a   :  { %932 = vmatpush1.bf16.msk.msra.mxu1 %vm931_vm2, %v973_v47  ;;  %vm529_vm5 = vcmp.lt.f32.partialorder %v465_v28, 3.0 }
 0x14b   :  { %v392_v30 = vpop.f32.mrb[58].mxu0  ;;  %vm530_vm7 = vcmp.lt.f32.partialorder %v466_v29, 3.0 }
 0x14c   :  { %v467_v31 = vand.u32 2147483647, %v392_v30  ;;  %v394_v32 = vpop.f32.mrb[59].mxu0 }
 0x14d   :  { %v468_v33 = vand.u32 2147483647, %v394_v32 }
 0x14e   :  { %vm531_vm6 = vcmp.lt.f32.partialorder %v467_v31, 3.0 }
 0x14f   :  { %vm935_vm8 = vmpackc.low %vm531_vm6, %vm529_vm5  ;;  %vm532_vm9 = vcmp.lt.f32.partialorder %v468_v33, 3.0  ;;  %v398_v34 = vpop.f32.mrb[60].mxu0 }
 0x150   :  { %vm933_vm10 = vmpackc.low %vm532_vm9, %vm530_vm7  ;;  %v400_v35 = vpop.f32.mrb[61].mxu0  ;;  %v469_v36 = vand.u32 2147483647, %v398_v34 }
 0x151   :  { %934 = vmatprep.subr.msk.bf16.mxu1 %vm933_vm10, %v973_v47  ;;  %v470_v38 = vand.u32 2147483647, %v400_v35 }
 0x152   :  { %936 = vmatpush1.bf16.msk.msra.mxu1 %vm935_vm8, %v973_v47  ;;  %vm533_vm11 = vcmp.lt.f32.partialorder %v469_v36, 3.0 }
 0x153   :  { %v404_v39 = vpop.f32.mrb[62].mxu0  ;;  %vm534_vm13 = vcmp.lt.f32.partialorder %v470_v38, 3.0 }
 0x154   :  { %v471_v40 = vand.u32 2147483647, %v404_v39  ;;  %v406_v41 = vpop.f32.mrb[63].mxu0 }
 0x155   :  { %v472_v42 = vand.u32 2147483647, %v406_v41 }
 0x156   :  { %vm535_vm12 = vcmp.lt.f32.partialorder %v471_v40, 3.0 }
 0x157   :  { %vm939_vm14 = vmpackc.low %vm535_vm12, %vm533_vm11  ;;  %vm536_vm15 = vcmp.lt.f32.partialorder %v472_v42, 3.0 }
 0x158   :  { %vm937_vm0 = vmpackc.low %vm536_vm15, %vm534_vm13 }
 0x159   :  { %938 = vmatprep.subr.msk.bf16.mxu1 %vm937_vm0, %v973_v47 }
 0x15a   :  { %940 = vmatpush1.bf16.msk.msra.mxu1 %vm939_vm14, %v973_v47 }
 0x15d   :  { %740 = vmatmul.mubr.bf16.vlgmr.msra.gmra.mrb[0].mxu1 %v875_v43 }
 0x230   :  { %v741_v44 = vpop.f32.mrb[0].mxu1 }
 0x231   :  { %vm757_vm1 = vcmp.gt.f32.partialorder %v741_v44, 0.0  ;;  %v743_v45 = vpop.f32.mrb[1].mxu1 }
 0x232   :  { %v941_v46 = vsel %vm757_vm1, 1.0, %v972_v3  ;;  %vm758_vm2 = vcmp.gt.f32.partialorder %v743_v45, 0.0  ;;  %v745_v48 = vpop.f32.mrb[2].mxu1 }
 0x233   :  { %763 = vst [vmem:[#allocation3] sm:$0xff] %v941_v46  ;;  %v942_v49 = vsel %vm758_vm2, 1.0, %v972_v3  ;;  %v746_v50 = vpop.f32.mrb[3].mxu1 }
 0x234   :  { %764 = vst [vmem:[#allocation3 + $0x8] sm:$0xff] %v942_v49 }
 0x235   :  { %959 = shalt.err (!%p956_p4)
}
 0x236   :  { %s960_s28 = scalar_lea.hbm %s1219_s3, 256 }
 0x237   :  { %p961_p5 = scmp.ne.s32.totalorder %s1219_s3, %s960_s28  ;;  %p964_p6 = scmp.lt.u32.totalorder %s960_s28, %s1219_s3 }
 0x239   :  { %p966_p7 = pnand %p964_p6, %p961_p5 }
 0x23b   :  { %969 = shalt.err (!%p966_p7)
}
 0x23c   :  { %774 = dma.vmem_to_hbm [thread:$0]  %s772_s1, 256, %s1219_s3, [#allocation4]  }
 0x23d   :  { %970 = dma.done.wait [#allocation4], 256  }
 0x23e   :  { %971 = vsyncadd [#allocation4], 4294967040 }
 0x23f   :  { %778 = vsyncpa [#allocation4], 1 }

</bundles_post_ra>
